<compile_context>
chip_gen: v7x
topology: tpu7x:2x2x1
jax: 0.10.0
libtpu: 0.0.40
codegen_flags: <defaults>
</compile_context>

<pallas_src>
import functools

import jax
import jax.numpy as jnp
from jax.experimental import pallas as pl
from jax.experimental.pallas import tpu as pltpu


def _round_up(n, m):
    return ((n + m - 1) // m) * m


def _qnet_kernel(x_ref, w1_ref, b1_ref, w2_ref, b2_ref, o_ref):
    # One batch tile per grid step; weights/biases are VMEM-resident
    # (constant index_map) so only x and the output tile stream per step.
    x = x_ref[...].astype(w1_ref.dtype)                               # (TB, I)
    h = jnp.dot(x, w1_ref[...], preferred_element_type=jnp.float32)   # (TB, Hp) fp32 acc
    h = jnp.maximum(h + b1_ref[...], 0.0)                             # fp32 bias + ReLU
    o = jnp.dot(h.astype(w2_ref.dtype), w2_ref[...],
                preferred_element_type=jnp.float32)                   # (TB, Op) fp32 acc
    o_ref[...] = (o + b2_ref[...]).astype(o_ref.dtype)                # lane-dense store


@functools.partial(jax.jit, static_argnames=("block_b", "use_bf16"))
def linear_qnet_forward(x, w1, b1, w2, b2, *, block_b=256, use_bf16=False):
    """Forward pass of Linear_QNet.

    Args:
      x:  (B, in_features)        float32
      w1: (in_features, hidden)   -- already transposed from PyTorch (out,in)
      b1: (hidden,)
      w2: (hidden, out_features)  -- already transposed from PyTorch (out,in)
      b2: (out_features,)
      block_b: batch-tile rows per grid step (static).
      use_bf16: cast matmul operands to bf16 (MXU-limited large batches on
                v6e/v7x); accumulation & epilogue stay fp32.
    Returns:
      (B, out_features) float32
    """
    B, I = x.shape
    H = w1.shape[1]
    O = w2.shape[1]

    mm_dtype = jnp.bfloat16 if use_bf16 else jnp.float32

    # Lane-dense hidden and output dims (zero padding is inert through ReLU).
    H_pad = _round_up(max(H, 128), 128)
    O_pad = _round_up(max(O, 128), 128)

    w1p = jnp.pad(w1, ((0, 0), (0, H_pad - H))).astype(mm_dtype)
    b1p = jnp.pad(b1, (0, H_pad - H)).reshape(1, H_pad).astype(jnp.float32)
    w2p = jnp.pad(w2, ((0, H_pad - H), (0, O_pad - O))).astype(mm_dtype)
    b2p = jnp.pad(b2, (0, O_pad - O)).reshape(1, O_pad).astype(jnp.float32)

    # Batch tile: small batches collapse to one 8-sublane-aligned block; large
    # batches use block_b-row tiles so each grid step dwarfs the ~0.35us
    # per-step overhead.
    TB = min(_round_up(block_b, 8), _round_up(B, 8))
    B_pad = _round_up(B, TB)
    xp = jnp.pad(x, ((0, B_pad - B), (0, 0)))

    out = pl.pallas_call(
        _qnet_kernel,
        out_shape=jax.ShapeDtypeStruct((B_pad, O_pad), jnp.float32),
        grid_spec=pltpu.PrefetchScalarGridSpec(
            num_scalar_prefetch=0,
            grid=(B_pad // TB,),
            in_specs=[
                pl.BlockSpec((TB, I), lambda i: (i, 0)),          # x: streamed per tile
                pl.BlockSpec((I, H_pad), lambda i: (0, 0)),       # w1 (padded): resident
                pl.BlockSpec((1, H_pad), lambda i: (0, 0)),       # b1 (padded): resident
                pl.BlockSpec((H_pad, O_pad), lambda i: (0, 0)),   # w2 (padded): resident
                pl.BlockSpec((1, O_pad), lambda i: (0, 0)),       # b2 (padded): resident
            ],
            out_specs=pl.BlockSpec((TB, O_pad), lambda i: (i, 0)),
        ),
        compiler_params=pltpu.CompilerParams(
            dimension_semantics=("parallel",),   # shard batch tiles across TCs (v7x)
        ),
    )(xp, w1p, b1p, w2p, b2p)

    return out[:B, :O]


def init_linear_params(key, in_features, out_features):
    """Deterministic init matching nn.Linear's default (uniform +- 1/sqrt(in))."""
    kw, kb = jax.random.split(key)
    bound = 1.0 / jnp.sqrt(jnp.float32(in_features))
    # PyTorch layout is (out, in); we return the transposed (in, out) directly.
    w_t = jax.random.uniform(kw, (in_features, out_features), jnp.float32,
                             minval=-bound, maxval=bound)
    b = jax.random.uniform(kb, (out_features,), jnp.float32,
                           minval=-bound, maxval=bound)
    return w_t, b


if __name__ == "__main__":
    # Shapes consistent with the Snake-AI Q-net: state = 11 features, 3 actions.
    input_size = 11
    hidden_size1 = 32
    output_size = 3

    root = jax.random.PRNGKey(0)
    k_x1, k_x2, k_l1, k_l2 = jax.random.split(root, 4)

    w1, b1 = init_linear_params(k_l1, input_size, hidden_size1)
    w2, b2 = init_linear_params(k_l2, hidden_size1, output_size)

    def ref_fwd(x):
        return jnp.maximum(x @ w1 + b1, 0.0) @ w2 + b2

    # 1) Small per-step inference batch (single grid step).
    x_small = jax.random.normal(k_x1, (4, input_size), jnp.float32)
    out_small = jax.block_until_ready(linear_qnet_forward(x_small, w1, b1, w2, b2))
    assert out_small.shape == (4, output_size)
    assert jnp.allclose(out_small, ref_fwd(x_small), atol=1e-5, rtol=1e-5)

    # 2) Replay-buffer-style batch (multiple grid steps, batch padded to tile).
    x_big = jax.random.normal(k_x2, (300, input_size), jnp.float32)
    out_big = jax.block_until_ready(
        linear_qnet_forward(x_big, w1, b1, w2, b2, block_b=128))
    assert out_big.shape == (300, output_size)
    assert jnp.allclose(out_big, ref_fwd(x_big), atol=1e-5, rtol=1e-5)

    # 3) bf16 MXU-operand path (fp32 accumulation/epilogue), loose tolerance.
    out_bf16 = jax.block_until_ready(
        linear_qnet_forward(x_big, w1, b1, w2, b2, block_b=128, use_bf16=True))
    assert out_bf16.shape == (300, output_size)
    assert jnp.allclose(out_bf16, ref_fwd(x_big), atol=5e-2, rtol=5e-2)

    print("KERNEL_OK")
</pallas_src>

<mosaic_0001>
module attributes {stable_mosaic.version = 11 : i64} {
  func.func @_qnet_kernel(%arg0: i32, %arg1: memref<8x11xf32, #tpu.memory_space<vmem>>, %arg2: memref<11x128xf32, #tpu.memory_space<vmem>>, %arg3: memref<1x128xf32, #tpu.memory_space<vmem>>, %arg4: memref<128x128xf32, #tpu.memory_space<vmem>>, %arg5: memref<1x128xf32, #tpu.memory_space<vmem>>, %arg6: memref<8x128xf32, #tpu.memory_space<vmem>>) attributes {dimension_semantics = [#tpu.dimension_semantics<parallel>], iteration_bounds = array<i64: 1>, scalar_prefetch = 0 : i64, scratch_operands = 0 : i64, tpu.core_type = #tpu.core_type<tc>, window_params = [{transform_indices = @transform_0, window_bounds = array<i64: 8, 11>}, {pipeline_mode = #tpu.pipeline_mode<synchronous>, transform_indices = @transform_1, window_bounds = array<i64: 11, 128>}, {pipeline_mode = #tpu.pipeline_mode<synchronous>, transform_indices = @transform_2, window_bounds = array<i64: 1, 128>}, {pipeline_mode = #tpu.pipeline_mode<synchronous>, transform_indices = @transform_3, window_bounds = array<i64: 128, 128>}, {pipeline_mode = #tpu.pipeline_mode<synchronous>, transform_indices = @transform_4, window_bounds = array<i64: 1, 128>}, {transform_indices = @transform_5, window_bounds = array<i64: 8, 128>}]} {
    %c0 = arith.constant 0 : index
    %c0_0 = arith.constant 0 : index
    %0 = vector.load %arg1[%c0, %c0_0] : memref<8x11xf32, #tpu.memory_space<vmem>>, vector<8x11xf32>
    %c0_1 = arith.constant 0 : index
    %c0_2 = arith.constant 0 : index
    %1 = vector.load %arg2[%c0_1, %c0_2] : memref<11x128xf32, #tpu.memory_space<vmem>>, vector<11x128xf32>
    %cst = arith.constant dense<0.000000e+00> : vector<8x128xf32>
    %2 = tpu.matmul %0, %1, %cst {dimension_numbers = #tpu.dot_dimension_numbers<[1], [0], [0], [1], [0, 0, 1, 1], [], []>} : vector<8x11xf32>, vector<11x128xf32>, vector<8x128xf32> -> vector<8x128xf32>
    %c0_3 = arith.constant 0 : index
    %c0_4 = arith.constant 0 : index
    %3 = vector.load %arg3[%c0_3, %c0_4] : memref<1x128xf32, #tpu.memory_space<vmem>>, vector<1x128xf32>
    %4 = vector.broadcast %3 : vector<1x128xf32> to vector<8x128xf32>
    %5 = arith.addf %2, %4 : vector<8x128xf32>
    %cst_5 = arith.constant 0.000000e+00 : f32
    %6 = vector.broadcast %cst_5 : f32 to vector<8x128xf32>
    %7 = arith.maximumf %5, %6 : vector<8x128xf32>
    %c0_6 = arith.constant 0 : index
    %c0_7 = arith.constant 0 : index
    %8 = vector.load %arg4[%c0_6, %c0_7] : memref<128x128xf32, #tpu.memory_space<vmem>>, vector<128x128xf32>
    %cst_8 = arith.constant dense<0.000000e+00> : vector<8x128xf32>
    %9 = tpu.matmul %7, %8, %cst_8 {dimension_numbers = #tpu.dot_dimension_numbers<[1], [0], [0], [1], [0, 0, 1, 1], [], []>} : vector<8x128xf32>, vector<128x128xf32>, vector<8x128xf32> -> vector<8x128xf32>
    %c0_9 = arith.constant 0 : index
    %c0_10 = arith.constant 0 : index
    %10 = vector.load %arg5[%c0_9, %c0_10] : memref<1x128xf32, #tpu.memory_space<vmem>>, vector<1x128xf32>
    %11 = vector.broadcast %10 : vector<1x128xf32> to vector<8x128xf32>
    %12 = arith.addf %9, %11 : vector<8x128xf32>
    %c0_11 = arith.constant 0 : index
    %c0_12 = arith.constant 0 : index
    %13 = vector.load %arg6[%c0_11, %c0_12] : memref<8x128xf32, #tpu.memory_space<vmem>>, vector<8x128xf32>
    tpu.vector_store %arg6[%c0_11, %c0_12], %12 {strides = array<i32>} : memref<8x128xf32, #tpu.memory_space<vmem>>, vector<8x128xf32>,
    return
  }
  func.func @transform_0(%arg0: i32) -> (i32, i32) {
    %c0_i32 = arith.constant 0 : i32
    %c0_i32_0 = arith.constant 0 : i32
    return %arg0, %c0_i32 : i32, i32
  }
  func.func @transform_1(%arg0: i32) -> (i32, i32) {
    %c0_i32 = arith.constant 0 : i32
    %c0_i32_0 = arith.constant 0 : i32
    %c0_i32_1 = arith.constant 0 : i32
    return %c0_i32, %c0_i32_0 : i32, i32
  }
  func.func @transform_2(%arg0: i32) -> (i32, i32) {
    %c0_i32 = arith.constant 0 : i32
    %c0_i32_0 = arith.constant 0 : i32
    %c0_i32_1 = arith.constant 0 : i32
    return %c0_i32, %c0_i32_0 : i32, i32
  }
  func.func @transform_3(%arg0: i32) -> (i32, i32) {
    %c0_i32 = arith.constant 0 : i32
    %c0_i32_0 = arith.constant 0 : i32
    %c0_i32_1 = arith.constant 0 : i32
    return %c0_i32, %c0_i32_0 : i32, i32
  }
  func.func @transform_4(%arg0: i32) -> (i32, i32) {
    %c0_i32 = arith.constant 0 : i32
    %c0_i32_0 = arith.constant 0 : i32
    %c0_i32_1 = arith.constant 0 : i32
    return %c0_i32, %c0_i32_0 : i32, i32
  }
  func.func @transform_5(%arg0: i32) -> (i32, i32) {
    %c0_i32 = arith.constant 0 : i32
    %c0_i32_0 = arith.constant 0 : i32
    return %arg0, %c0_i32 : i32, i32
  }
}

</mosaic_0001>

<bundles_post_ra>
// kernel: linear_qnet_forward.1
= control target key start
LH: loop header
LB: loop body
LE: loop exit
PB: predicated region body
PF: predicated region fallthrough
CT: control target
= control target key end

     0   :  { %vm34_vm0 = vcmask 1042432   ;;  %v305_v0 = vmov 0.0|0.0   ;;  %vm306_vm1 = vmmov 1   ;;  %vm307_vm3 = vmmov 0   ;;  %s405_s1 = inlined_call_operand.vmem [shape: f32[11,128], index: 1, kind: input, shape index: {}]   ;;  %s406_s3 = inlined_call_operand.vmem [shape: f32[128,128], index: 3, kind: input, shape index: {}]   ;;  %s407_s0 = inlined_call_operand.vmem [shape: f32[8,11], index: 0, kind: input, shape index: {}]   ;;  %s408_s2 = inlined_call_operand.vmem [shape: f32[1,128], index: 2, kind: input, shape index: {}]   ;;  %s409_s4 = inlined_call_operand.vmem [shape: f32[1,128], index: 4, kind: input, shape index: {}]   ;;  %s410_s5 = inlined_call_operand.vmem [shape: f32[8,128], index: 5, kind: output, shape index: {}]  }
   0x1   :  { %273 = vmatprep.subr.bf16.mxu0 %v305_v0  ;;  %v21_v1 = vld [vmem:[%s405_s1] sm:$0xff]  ;;  %v22_v2 = vld [vmem:[%s405_s1 + $0x8] sm:$0x7]  ;;  %vm275_vm2 = vmpackc.low %vm34_vm0, %vm306_vm1  ;;  %277 = vmatprep.subr.bf16.mxu1 %v305_v0  ;;  %v308_v4 = vmov 0.0   ;;  %vm30_vm4 = vcmask 89088  }
   0x2   :  { %v274_v3 = vpack.c.bf16 %v22_v2, %v21_v1  ;;  %235 = vmatprep.mubr.msk.f32.mxu0 %vm307_vm3, %v308_v4  ;;  %v109_v5 = vld [vmem:[%s406_s3] sm:$0xff]  ;;  %v110_v6 = vld [vmem:[%s406_s3 + $0x8] sm:$0xff]  ;;  %270 = vmatprep.mubr.msk.f32.mxu1 %vm307_vm3, %v308_v4  ;;  %v111_v8 = vld [vmem:[%s406_s3 + $0x10] sm:$0xff] }
   0x3   :  { %v278_v7 = vpack.c.bf16 %v110_v6, %v109_v5  ;;  %v112_v9 = vld [vmem:[%s406_s3 + $0x18] sm:$0xff]  ;;  %v20_v10 = vld [vmem:[%s407_s0] sm:$0xff]  ;;  %v114_v13 = vld [vmem:[%s406_s3 + $0x28] sm:$0xff] }
   0x4   :  { %276 = vmatpush3.bf16.msk.msra.mxu0 %vm275_vm2, %v274_v3  ;;  %v281_v11 = vpack.c.bf16 %v112_v9, %v111_v8  ;;  %v113_v12 = vld [vmem:[%s406_s3 + $0x20] sm:$0xff]  ;;  %v115_v15 = vld [vmem:[%s406_s3 + $0x30] sm:$0xff]  ;;  %v116_v16 = vld [vmem:[%s406_s3 + $0x38] sm:$0xff] }
   0x5   :  { %279 = vmatpush3.bf16.msra.mxu1 %v278_v7  ;;  %v284_v14 = vpack.c.bf16 %v114_v13, %v113_v12  ;;  %v287_v17 = vpack.c.bf16 %v116_v16, %v115_v15  ;;  %v117_v18 = vld [vmem:[%s406_s3 + $0x40] sm:$0xff]  ;;  %v118_v19 = vld [vmem:[%s406_s3 + $0x48] sm:$0xff]  ;;  %v119_v21 = vld [vmem:[%s406_s3 + $0x50] sm:$0xff] }
   0x6   :  { %280 = vmatprep.subr.bf16.mxu1 %v305_v0  ;;  %v290_v20 = vpack.c.bf16 %v118_v19, %v117_v18  ;;  %v120_v22 = vld [vmem:[%s406_s3 + $0x58] sm:$0xff]  ;;  %v121_v24 = vld [vmem:[%s406_s3 + $0x60] sm:$0xff]  ;;  %v122_v25 = vld [vmem:[%s406_s3 + $0x68] sm:$0xff] }
   0x7   :  { %236 = vmatmul.mubr.msk.f32.vlgmr.msra.gmra.mrb[0].mxu0 %vm30_vm4, %v20_v10  ;;  %v293_v23 = vpack.c.bf16 %v120_v22, %v119_v21  ;;  %v296_v26 = vpack.c.bf16 %v122_v25, %v121_v24  ;;  %v123_v27 = vld [vmem:[%s406_s3 + $0x70] sm:$0xff]  ;;  %v124_v28 = vld [vmem:[%s406_s3 + $0x78] sm:$0xff]  ;;  %v207_v30 = vld [vmem:[%s408_s2] ss:$0 sm:$0xff] }
   0x8   :  { %v299_v29 = vpack.c.bf16 %v124_v28, %v123_v27  ;;  %v210_v35 = vld [vmem:[%s409_s4] ss:$0 sm:$0xff] }
   0x9   :  { %282 = vmatpush3.bf16.msra.mxu1 %v281_v11 }
   0xa   :  { %283 = vmatprep.subr.bf16.mxu1 %v305_v0 }
   0xd   :  { %285 = vmatpush3.bf16.msra.mxu1 %v284_v14 }
   0xe   :  { %286 = vmatprep.subr.bf16.mxu1 %v305_v0 }
  0x11   :  { %288 = vmatpush3.bf16.msra.mxu1 %v287_v17 }
  0x12   :  { %289 = vmatprep.subr.bf16.mxu1 %v305_v0 }
  0x15   :  { %291 = vmatpush3.bf16.msra.mxu1 %v290_v20 }
  0x16   :  { %292 = vmatprep.subr.bf16.mxu1 %v305_v0 }
  0x19   :  { %294 = vmatpush3.bf16.msra.mxu1 %v293_v23 }
  0x1a   :  { %295 = vmatprep.subr.bf16.mxu1 %v305_v0 }
  0x1d   :  { %297 = vmatpush3.bf16.msra.mxu1 %v296_v26 }
  0x1e   :  { %298 = vmatprep.subr.bf16.mxu1 %v305_v0 }
  0x21   :  { %300 = vmatpush3.bf16.msra.mxu1 %v299_v29 }
  0xda   :  { %v104_v31 = vpop.f32.mrb[0].mxu0 }
  0xdb   :  { %v105_v32 = vadd.f32 %v207_v30, %v104_v31  ;;  %v237_v33 = vpop.f32.mrb[1].mxu0 }
  0xdd   :  { %v108_v34 = vmax.f32 %v105_v32, 0.0 }
  0xdf   :  { %271 = vmatmul.mubr.f32.vlgmr.msra.gmra.mrb[0].mxu1 %v108_v34 }
 0x1b2   :  { %v198_v36 = vpop.f32.mrb[0].mxu1 }
 0x1b3   :  { %v199_v37 = vadd.f32 %v210_v35, %v198_v36  ;;  %v272_v38 = vpop.f32.mrb[1].mxu1 }
 0x1b5   :  { %202 = vst [vmem:[%s410_s5] sm:$0xff] %v199_v37 }

</bundles_post_ra>
